<compile_context>
chip_gen: v7x
topology: tpu7x:2x2x1
jax: 0.10.0
libtpu: 0.0.40
codegen_flags: <defaults>
</compile_context>

<pallas_src>
import math
import functools

import jax
import jax.numpy as jnp
from jax import lax
from jax.experimental import pallas as pl
from jax.experimental.pallas import tpu as pltpu


def _round_up(x, m):
    return (x + m - 1) // m * m


# ---------------------------------------------------------------------------
# Fused kernel: 1x1 conv + BN + ReLU -> KxK depthwise + BN + ReLU -> store
# ---------------------------------------------------------------------------
def _ghost_fused_kernel(x_ref, w1_ref, b1_ref, wc_ref, bc_ref, o_ref, x1_ref,
                        *, th, W, Ctot, KH, KW, ph, pw, H):
    """One (batch, row-tile) grid step; everything is lane-dense.

    x_ref  : (1, H+2ph, W*Cin)        bf16  H-padded input image (resident per b)
    w1_ref : (W*Cin, (W+2pw)*Ctot)    bf16  block-diag, BN-folded 1x1 weight
    b1_ref : (1, (W+2pw)*Ctot)        f32   folded 1x1 bias (0 in the pad cols)
    wc_ref : (KH*KW, W*Ctot)          f32   folded depthwise taps, tiled over W
    bc_ref : (1, W*Ctot)              f32   folded depthwise bias, tiled over W
    o_ref  : (1, th, W*Ctot)          bf16  output rows [i*th, i*th + th)
    x1_ref : (th+2ph, (W+2pw)*Ctot)   f32   VMEM scratch holding the padded x1
    """
    i = pl.program_id(1)
    n_rows = th + 2 * ph
    lanes = W * Ctot

    # Tiny weights: load once, outside all loops.
    w1 = w1_ref[...]
    b1 = b1_ref[...]
    wc = wc_ref[...]
    bc = bc_ref[...]

    # ---- primary 1x1 conv (+folded BN) + ReLU over tile rows and halo ------
    # bf16 x bf16 -> f32 on the MXU; one dot per step (halo rows included).
    # The block-diagonal weight emits the lane-dense, horizontally padded x1
    # layout directly, so there is no in-kernel reshape and no pl.when.
    start = pl.multiple_of(i * th, th)
    x_rows = x_ref[0, pl.ds(start, n_rows), :]              # (n_rows, W*Cin) bf16
    y1 = jnp.dot(x_rows, w1, preferred_element_type=jnp.float32) + b1
    y1 = jnp.maximum(y1, 0.0)
    if ph > 0:
        # Rows outside the image must be exactly zero (Conv2d zero padding of
        # x1 feeding the depthwise conv), not relu(bias).
        row = i * th - ph + lax.broadcasted_iota(jnp.int32, (n_rows, 1), 0)
        y1 = jnp.where(jnp.logical_and(row >= 0, row < H), y1, 0.0)

    # Keep x1 resident in VMEM.  The whole scratch is overwritten every step
    # (pad columns are zero straight out of the matmul), so there is no
    # per-step zero-fill and no stale-data hazard.
    x1_ref[...] = y1

    # ---- cheap op: KxK depthwise + folded BN + ReLU -------------------------
    # Channels [0, Cinit) carry a delta tap + zero bias -> pass-through of x1,
    # which realizes concat([x1, x2]) for free.  Each tap is a full-vreg VALU
    # multiply-add; the dx shift is a static lane offset (XLU slot).
    ctr = (KH // 2) * KW + (KW // 2)

    def tap(t):
        dy, dx = t // KW, t % KW
        return x1_ref[dy:dy + th, dx * Ctot:dx * Ctot + lanes]

    acc = tap(ctr) * wc[ctr:ctr + 1, :] + bc           # init = center tap + bias
    for t in range(KH * KW):                           # static, unrolled taps
        if t != ctr:
            acc = acc + tap(t) * wc[t:t + 1, :]
    o_ref[0] = jnp.maximum(acc, 0.0).astype(o_ref.dtype)


def _pick_row_tile(H, W, Cin, Ctot, ph, pw, budget_bytes=12 << 20):
    """Largest row tile (divisor of H; 8-aligned unless it is H itself) whose
    per-step VMEM footprint fits the budget."""
    lanes_in = _round_up(W * Cin, 128)
    lanes_x1 = _round_up((W + 2 * pw) * Ctot, 128)
    lanes_out = _round_up(W * Ctot, 128)
    fixed = 2 * (H + 2 * ph) * lanes_in * 2            # resident input, 2 bufs, bf16

    def fits(th):
        per = ((th + 2 * ph) * lanes_x1 * 8            # f32 scratch + live f32 y1
               + 2 * th * lanes_out * 2)               # output, 2 bufs, bf16
        return fixed + per <= budget_bytes

    cands = [d for d in range(1, H + 1)
             if H % d == 0 and (d == H or d % 8 == 0) and fits(d)]
    if cands:
        return max(cands)
    aligned = [d for d in range(1, H + 1) if H % d == 0 and d % 8 == 0]
    return min(aligned) if aligned else H


# ---------------------------------------------------------------------------
# Public wrapper ('original' mode forward)
# ---------------------------------------------------------------------------
def ghost_conv2d_v2_original(x_nchw, fused, *, row_tile=None):
    w1, b1, wc, bc = fused["w1"], fused["b1"], fused["wc"], fused["bc"]  # f32
    out_c = fused["out_channels"]
    KH, KW = fused["dw_kernel_size"]
    Cin, Ctot = w1.shape
    B, Cx, H, W = x_nchw.shape
    assert Cx == Cin, (Cx, Cin)
    ph, pw = KH // 2, KW // 2

    th = row_tile if row_tile is not None else _pick_row_tile(H, W, Cin, Ctot, ph, pw)
    assert H % th == 0, (H, th)
    n_h = H // th

    # Lane-dense input, H-padded so each row tile can read its halo rows.
    x = jnp.transpose(x_nchw, (0, 2, 3, 1)).astype(jnp.bfloat16)
    x = x.reshape(B, H, W * Cin)
    if ph > 0:
        x = jnp.pad(x, ((0, 0), (ph, ph), (0, 0)))

    # Block-diagonal 1x1 weight producing the lane-dense, W-padded x1 layout.
    eye = jnp.eye(W, dtype=jnp.float32)
    w1_bd = jnp.einsum("wv,cd->wcvd", eye, w1).reshape(W * Cin, W * Ctot)
    w1_bd = jnp.pad(w1_bd, ((0, 0), (pw * Ctot, pw * Ctot))).astype(jnp.bfloat16)
    b1_t = jnp.pad(jnp.tile(b1, W), (pw * Ctot, pw * Ctot))[None, :]     # f32
    wc_t = jnp.tile(wc, (1, W))                                          # f32
    bc_t = jnp.tile(bc, W)[None, :]                                      # f32

    # Explicit VMEM budget derived from the actual tile sizes.
    lanes_in = _round_up(W * Cin, 128)
    lanes_x1 = _round_up((W + 2 * pw) * Ctot, 128)
    lanes_out = _round_up(W * Ctot, 128)
    est = (2 * (H + 2 * ph) * lanes_in * 2
           + (th + 2 * ph) * lanes_x1 * 8
           + 2 * th * lanes_out * 2
           + 2 * _round_up(W * Cin, 8) * lanes_x1 * 2
           + 4 * 8 * lanes_x1 * 4)
    vmem_limit = int(min(max(2 * est + (8 << 20), 32 << 20), 64 << 20))

    kern = functools.partial(
        _ghost_fused_kernel, th=th, W=W, Ctot=Ctot, KH=KH, KW=KW,
        ph=ph, pw=pw, H=H)

    y = pl.pallas_call(
        kern,
        out_shape=jax.ShapeDtypeStruct((B, H, W * Ctot), jnp.bfloat16),
        grid=(B, n_h),
        in_specs=[
            pl.BlockSpec((1, H + 2 * ph, W * Cin), lambda b, i: (b, 0, 0)),
            pl.BlockSpec((W * Cin, (W + 2 * pw) * Ctot), lambda b, i: (0, 0)),
            pl.BlockSpec((1, (W + 2 * pw) * Ctot), lambda b, i: (0, 0)),
            pl.BlockSpec((KH * KW, W * Ctot), lambda b, i: (0, 0)),
            pl.BlockSpec((1, W * Ctot), lambda b, i: (0, 0)),
        ],
        out_specs=pl.BlockSpec((1, th, W * Ctot), lambda b, i: (b, i, 0)),
        scratch_shapes=[
            pltpu.VMEM((th + 2 * ph, (W + 2 * pw) * Ctot), jnp.float32)],
        compiler_params=pltpu.CompilerParams(
            dimension_semantics=("parallel", "parallel"),
            vmem_limit_bytes=vmem_limit),
    )(x, w1_bd, b1_t, wc_t, bc_t)

    # Lane-dense (B, H, W*Ctot) -> NCHW, truncated to out_channels.
    y = y.reshape(B, H, W, Ctot)[..., :out_c]
    return jnp.transpose(y, (0, 3, 1, 2))


# ---------------------------------------------------------------------------
# Deterministic raw parameters (torch layouts) and fused-parameter folding
# ---------------------------------------------------------------------------
def make_params(key, in_channels, out_channels, ratio, dw_kernel_size, eps=1e-5):
    init_channels = math.ceil(out_channels / ratio)
    new_channels = init_channels * (ratio - 1)
    k1, k2 = jax.random.split(key, 2)
    w_prim = jax.random.normal(
        k1, (init_channels, in_channels, 1, 1), jnp.float32) * 0.1
    w_cheap = jax.random.normal(
        k2, (new_channels, 1, dw_kernel_size, dw_kernel_size), jnp.float32) * 0.1

    def bn(c):
        gamma = 1.0 + 0.1 * jnp.arange(c, dtype=jnp.float32)
        beta = 0.05 * jnp.arange(c, dtype=jnp.float32)
        mean = 0.02 * jnp.arange(c, dtype=jnp.float32)
        var = 1.0 + 0.03 * jnp.arange(c, dtype=jnp.float32)
        return gamma, beta, mean, var

    return dict(w_prim=w_prim, bn_prim=bn(init_channels),
                w_cheap=w_cheap, bn_cheap=bn(new_channels),
                init_channels=init_channels, new_channels=new_channels,
                out_channels=out_channels, ratio=ratio,
                dw_kernel_size=(dw_kernel_size, dw_kernel_size), eps=eps)


def prepare_fused_params(raw):
    """Fold inference-mode BN into the conv weights; fold the grouped-conv
    channel replication and the concat into the parameter layout."""
    eps = raw["eps"]
    Cinit, Cnew = raw["init_channels"], raw["new_channels"]
    rep = max(raw["ratio"] - 1, 1)
    KH, KW = raw["dw_kernel_size"]

    gp, bp, mp, vp = raw["bn_prim"]
    sp = gp / jnp.sqrt(vp + eps)
    op = bp - mp * sp
    gc, bcv, mc, vc = raw["bn_cheap"]
    sc = gc / jnp.sqrt(vc + eps)
    oc = bcv - mc * sc

    # primary 1x1: torch (Cinit, Cin, 1, 1) -> (Cin, Cinit), BN scale folded;
    # columns [Cinit:) replicate column j//rep (grouped-conv input mapping).
    wp = jnp.transpose(raw["w_prim"][:, :, 0, 0], (1, 0)) * sp[None, :]
    rep_idx = jnp.arange(Cnew) // rep
    w1 = jnp.concatenate([wp, wp[:, rep_idx]], axis=1)            # (Cin, Ctot)
    b1 = jnp.concatenate([op, op[rep_idx]])                       # (Ctot,)

    # depthwise: torch (Cnew, 1, KH, KW) -> (KH*KW, Cnew), BN scale folded;
    # prepend a delta/identity kernel (zero bias) for the pass-through channels.
    wdw = jnp.transpose(raw["w_cheap"][:, 0], (1, 2, 0)).reshape(KH * KW, Cnew)
    wdw = wdw * sc[None, :]
    delta = jnp.zeros((KH * KW, Cinit), jnp.float32)
    delta = delta.at[(KH // 2) * KW + (KW // 2)].set(1.0)
    wc = jnp.concatenate([delta, wdw], axis=1)                    # (KH*KW, Ctot)
    bc = jnp.concatenate([jnp.zeros((Cinit,), jnp.float32), oc])  # (Ctot,)

    return dict(w1=w1, b1=b1, wc=wc, bc=bc,
                out_channels=raw["out_channels"], dw_kernel_size=(KH, KW))


# ---------------------------------------------------------------------------
# Pure-JAX reference (mirrors the PyTorch module, inference-mode BN)
# ---------------------------------------------------------------------------
def reference_forward(x_nchw, raw):
    eps = raw["eps"]
    Cnew = raw["new_channels"]
    rep = max(raw["ratio"] - 1, 1)
    KH, KW = raw["dw_kernel_size"]
    # Same bf16-rounded input the kernel sees; all math in f32.
    x = jnp.transpose(x_nchw, (0, 2, 3, 1)).astype(jnp.bfloat16)
    x = x.astype(jnp.float32)

    gp, bp, mp, vp = raw["bn_prim"]
    wp = jnp.transpose(raw["w_prim"][:, :, 0, 0], (1, 0))
    y1 = jnp.einsum("bhwc,cd->bhwd", x, wp)
    y1 = jnp.maximum((y1 - mp) / jnp.sqrt(vp + eps) * gp + bp, 0.0)

    xr = y1[..., jnp.arange(Cnew) // rep]                 # grouped-conv mapping
    wdw = jnp.transpose(raw["w_cheap"][:, 0], (1, 2, 0))  # (KH, KW, Cnew)
    ph, pw = KH // 2, KW // 2
    xp = jnp.pad(xr, ((0, 0), (ph, ph), (pw, pw), (0, 0)))
    H, W = y1.shape[1], y1.shape[2]
    acc = jnp.zeros_like(xr)
    for dy in range(KH):
        for dx in range(KW):
            acc = acc + xp[:, dy:dy + H, dx:dx + W, :] * wdw[dy, dx]
    gc, bcv, mc, vc = raw["bn_cheap"]
    y2 = jnp.maximum((acc - mc) / jnp.sqrt(vc + eps) * gc + bcv, 0.0)

    y = jnp.concatenate([y1, y2], axis=-1)[..., :raw["out_channels"]]
    return jnp.transpose(y, (0, 3, 1, 2))


if __name__ == "__main__":
    B, Cin, H, W = 2, 4, 16, 16
    out_channels, ratio, dw_kernel_size = 8, 2, 3

    key = jax.random.PRNGKey(0)
    kp, kx = jax.random.split(key)
    raw = make_params(kp, Cin, out_channels, ratio, dw_kernel_size)
    fused = prepare_fused_params(raw)

    x = jax.random.normal(kx, (B, Cin, H, W), jnp.float32)

    y = ghost_conv2d_v2_original(x, fused)   # auto row tile -> grid (2, 1)
    y = jax.block_until_ready(y)

    y_ref = reference_forward(x, raw)
    assert y.shape == (B, out_channels, H, W), y.shape
    max_err = float(jnp.max(jnp.abs(y.astype(jnp.float32) - y_ref)))
    assert max_err < 5e-2, f"mismatch vs reference: max abs err {max_err}"

    print("KERNEL_OK")
</pallas_src>

<mosaic_0001>
module attributes {stable_mosaic.version = 11 : i64} {
  func.func @_ghost_fused_kernel(%arg0: i32, %arg1: i32, %arg2: memref<1x18x64xbf16, #tpu.memory_space<vmem>>, %arg3: memref<64x144xbf16, #tpu.memory_space<vmem>>, %arg4: memref<1x144xf32, #tpu.memory_space<vmem>>, %arg5: memref<9x128xf32, #tpu.memory_space<vmem>>, %arg6: memref<1x128xf32, #tpu.memory_space<vmem>>, %arg7: memref<1x16x128xbf16, #tpu.memory_space<vmem>>, %arg8: memref<18x144xf32, #tpu.memory_space<vmem>>) attributes {dimension_semantics = [#tpu.dimension_semantics<parallel>, #tpu.dimension_semantics<parallel>], iteration_bounds = array<i64: 2, 1>, scalar_prefetch = 0 : i64, scratch_operands = 1 : i64, tpu.core_type = #tpu.core_type<tc>, window_params = [{transform_indices = @transform_0, window_bounds = array<i64: 1, 18, 64>}, {pipeline_mode = #tpu.pipeline_mode<synchronous>, transform_indices = @transform_1, window_bounds = array<i64: 64, 144>}, {pipeline_mode = #tpu.pipeline_mode<synchronous>, transform_indices = @transform_2, window_bounds = array<i64: 1, 144>}, {pipeline_mode = #tpu.pipeline_mode<synchronous>, transform_indices = @transform_3, window_bounds = array<i64: 9, 128>}, {pipeline_mode = #tpu.pipeline_mode<synchronous>, transform_indices = @transform_4, window_bounds = array<i64: 1, 128>}, {transform_indices = @transform_5, window_bounds = array<i64: 1, 16, 128>}]} {
    %c0 = arith.constant 0 : index
    %c0_0 = arith.constant 0 : index
    %0 = vector.load %arg3[%c0, %c0_0] : memref<64x144xbf16, #tpu.memory_space<vmem>>, vector<64x144xbf16>
    %c0_1 = arith.constant 0 : index
    %c0_2 = arith.constant 0 : index
    %1 = vector.load %arg4[%c0_1, %c0_2] : memref<1x144xf32, #tpu.memory_space<vmem>>, vector<1x144xf32>
    %c0_3 = arith.constant 0 : index
    %c0_4 = arith.constant 0 : index
    %2 = vector.load %arg5[%c0_3, %c0_4] : memref<9x128xf32, #tpu.memory_space<vmem>>, vector<9x128xf32>
    %c0_5 = arith.constant 0 : index
    %c0_6 = arith.constant 0 : index
    %3 = vector.load %arg6[%c0_5, %c0_6] : memref<1x128xf32, #tpu.memory_space<vmem>>, vector<1x128xf32>
    %c16_i32 = arith.constant 16 : i32
    %4 = arith.muli %arg1, %c16_i32 : i32
    %5 = tpu.assume_multiple %4, 16 : i32
    %c0_7 = arith.constant 0 : index
    %6 = arith.index_cast %5 : i32 to index
    %c0_8 = arith.constant 0 : index
    %7 = vector.load %arg2[%c0_7, %6, %c0_8] : memref<1x18x64xbf16, #tpu.memory_space<vmem>>, vector<1x18x64xbf16>
    %8 = vector.shape_cast %7 : vector<1x18x64xbf16> to vector<18x64xbf16>
    %cst = arith.constant dense<0.000000e+00> : vector<18x144xf32>
    %9 = tpu.matmul %8, %0, %cst {dimension_numbers = #tpu.dot_dimension_numbers<[1], [0], [0], [1], [0, 0, 1, 1], [], []>} : vector<18x64xbf16>, vector<64x144xbf16>, vector<18x144xf32> -> vector<18x144xf32>
    %10 = vector.broadcast %1 : vector<1x144xf32> to vector<18x144xf32>
    %11 = arith.addf %9, %10 : vector<18x144xf32>
    %cst_9 = arith.constant 0.000000e+00 : f32
    %12 = vector.broadcast %cst_9 : f32 to vector<18x144xf32>
    %13 = arith.maximumf %11, %12 : vector<18x144xf32>
    %c16_i32_10 = arith.constant 16 : i32
    %14 = arith.muli %arg1, %c16_i32_10 : i32
    %c1_i32 = arith.constant 1 : i32
    %15 = arith.subi %14, %c1_i32 : i32
    %16 = tpu.iota {dimensions = array<i32: 0>} : vector<18x1xi32>
    %17 = vector.broadcast %15 : i32 to vector<18x1xi32>
    %18 = arith.addi %17, %16 : vector<18x1xi32>
    %c0_i32 = arith.constant 0 : i32
    %19 = vector.broadcast %c0_i32 : i32 to vector<18x1xi32>
    %20 = arith.cmpi sge, %18, %19 : vector<18x1xi32>
    %c16_i32_11 = arith.constant 16 : i32
    %21 = vector.broadcast %c16_i32_11 : i32 to vector<18x1xi32>
    %22 = arith.cmpi slt, %18, %21 : vector<18x1xi32>
    %23 = arith.andi %20, %22 : vector<18x1xi1>
    %cst_12 = arith.constant 0.000000e+00 : f32
    %24 = vector.shape_cast %23 : vector<18x1xi1> to vector<18x1xi1>
    %25 = vector.broadcast %24 : vector<18x1xi1> to vector<18x144xi1>
    %26 = vector.broadcast %cst_12 : f32 to vector<18x144xf32>
    %27 = arith.select %25, %13, %26 : vector<18x144xi1>, vector<18x144xf32>
    %c0_13 = arith.constant 0 : index
    %c0_14 = arith.constant 0 : index
    %28 = vector.load %arg8[%c0_13, %c0_14] : memref<18x144xf32, #tpu.memory_space<vmem>>, vector<18x144xf32>
    tpu.vector_store %arg8[%c0_13, %c0_14], %27 {strides = array<i32>} : memref<18x144xf32, #tpu.memory_space<vmem>>, vector<18x144xf32>,
    %c1 = arith.constant 1 : index
    %c8 = arith.constant 8 : index
    %29 = vector.load %arg8[%c1, %c8] : memref<18x144xf32, #tpu.memory_space<vmem>>, vector<16x128xf32>
    %30 = vector.extract_strided_slice %2 {offsets = [4, 0], sizes = [1, 128], strides = [1, 1]} : vector<9x128xf32> to vector<1x128xf32>
    %31 = vector.broadcast %30 : vector<1x128xf32> to vector<16x128xf32>
    %32 = arith.mulf %29, %31 : vector<16x128xf32>
    %33 = vector.broadcast %3 : vector<1x128xf32> to vector<16x128xf32>
    %34 = arith.addf %32, %33 : vector<16x128xf32>
    %c0_15 = arith.constant 0 : index
    %c0_16 = arith.constant 0 : index
    %35 = vector.load %arg8[%c0_15, %c0_16] : memref<18x144xf32, #tpu.memory_space<vmem>>, vector<16x128xf32>
    %36 = vector.extract_strided_slice %2 {offsets = [0, 0], sizes = [1, 128], strides = [1, 1]} : vector<9x128xf32> to vector<1x128xf32>
    %37 = vector.broadcast %36 : vector<1x128xf32> to vector<16x128xf32>
    %38 = arith.mulf %35, %37 : vector<16x128xf32>
    %39 = arith.addf %34, %38 : vector<16x128xf32>
    %c0_17 = arith.constant 0 : index
    %c8_18 = arith.constant 8 : index
    %40 = vector.load %arg8[%c0_17, %c8_18] : memref<18x144xf32, #tpu.memory_space<vmem>>, vector<16x128xf32>
    %41 = vector.extract_strided_slice %2 {offsets = [1, 0], sizes = [1, 128], strides = [1, 1]} : vector<9x128xf32> to vector<1x128xf32>
    %42 = vector.broadcast %41 : vector<1x128xf32> to vector<16x128xf32>
    %43 = arith.mulf %40, %42 : vector<16x128xf32>
    %44 = arith.addf %39, %43 : vector<16x128xf32>
    %c0_19 = arith.constant 0 : index
    %c16 = arith.constant 16 : index
    %45 = vector.load %arg8[%c0_19, %c16] : memref<18x144xf32, #tpu.memory_space<vmem>>, vector<16x128xf32>
    %46 = vector.extract_strided_slice %2 {offsets = [2, 0], sizes = [1, 128], strides = [1, 1]} : vector<9x128xf32> to vector<1x128xf32>
    %47 = vector.broadcast %46 : vector<1x128xf32> to vector<16x128xf32>
    %48 = arith.mulf %45, %47 : vector<16x128xf32>
    %49 = arith.addf %44, %48 : vector<16x128xf32>
    %c1_20 = arith.constant 1 : index
    %c0_21 = arith.constant 0 : index
    %50 = vector.load %arg8[%c1_20, %c0_21] : memref<18x144xf32, #tpu.memory_space<vmem>>, vector<16x128xf32>
    %51 = vector.extract_strided_slice %2 {offsets = [3, 0], sizes = [1, 128], strides = [1, 1]} : vector<9x128xf32> to vector<1x128xf32>
    %52 = vector.broadcast %51 : vector<1x128xf32> to vector<16x128xf32>
    %53 = arith.mulf %50, %52 : vector<16x128xf32>
    %54 = arith.addf %49, %53 : vector<16x128xf32>
    %c1_22 = arith.constant 1 : index
    %c16_23 = arith.constant 16 : index
    %55 = vector.load %arg8[%c1_22, %c16_23] : memref<18x144xf32, #tpu.memory_space<vmem>>, vector<16x128xf32>
    %56 = vector.extract_strided_slice %2 {offsets = [5, 0], sizes = [1, 128], strides = [1, 1]} : vector<9x128xf32> to vector<1x128xf32>
    %57 = vector.broadcast %56 : vector<1x128xf32> to vector<16x128xf32>
    %58 = arith.mulf %55, %57 : vector<16x128xf32>
    %59 = arith.addf %54, %58 : vector<16x128xf32>
    %c2 = arith.constant 2 : index
    %c0_24 = arith.constant 0 : index
    %60 = vector.load %arg8[%c2, %c0_24] : memref<18x144xf32, #tpu.memory_space<vmem>>, vector<16x128xf32>
    %61 = vector.extract_strided_slice %2 {offsets = [6, 0], sizes = [1, 128], strides = [1, 1]} : vector<9x128xf32> to vector<1x128xf32>
    %62 = vector.broadcast %61 : vector<1x128xf32> to vector<16x128xf32>
    %63 = arith.mulf %60, %62 : vector<16x128xf32>
    %64 = arith.addf %59, %63 : vector<16x128xf32>
    %c2_25 = arith.constant 2 : index
    %c8_26 = arith.constant 8 : index
    %65 = vector.load %arg8[%c2_25, %c8_26] : memref<18x144xf32, #tpu.memory_space<vmem>>, vector<16x128xf32>
    %66 = vector.extract_strided_slice %2 {offsets = [7, 0], sizes = [1, 128], strides = [1, 1]} : vector<9x128xf32> to vector<1x128xf32>
    %67 = vector.broadcast %66 : vector<1x128xf32> to vector<16x128xf32>
    %68 = arith.mulf %65, %67 : vector<16x128xf32>
    %69 = arith.addf %64, %68 : vector<16x128xf32>
    %c2_27 = arith.constant 2 : index
    %c16_28 = arith.constant 16 : index
    %70 = vector.load %arg8[%c2_27, %c16_28] : memref<18x144xf32, #tpu.memory_space<vmem>>, vector<16x128xf32>
    %71 = vector.extract_strided_slice %2 {offsets = [8, 0], sizes = [1, 128], strides = [1, 1]} : vector<9x128xf32> to vector<1x128xf32>
    %72 = vector.broadcast %71 : vector<1x128xf32> to vector<16x128xf32>
    %73 = arith.mulf %70, %72 : vector<16x128xf32>
    %74 = arith.addf %69, %73 : vector<16x128xf32>
    %cst_29 = arith.constant 0.000000e+00 : f32
    %75 = vector.broadcast %cst_29 : f32 to vector<16x128xf32>
    %76 = arith.maximumf %74, %75 : vector<16x128xf32>
    %77 = arith.truncf %76 : vector<16x128xf32> to vector<16x128xbf16>
    %c0_30 = arith.constant 0 : index
    %c0_31 = arith.constant 0 : index
    %c0_32 = arith.constant 0 : index
    %78 = vector.load %arg7[%c0_30, %c0_31, %c0_32] : memref<1x16x128xbf16, #tpu.memory_space<vmem>>, vector<1x16x128xbf16>
    %79 = vector.shape_cast %78 : vector<1x16x128xbf16> to vector<16x128xbf16>
    %80 = vector.shape_cast %77 : vector<16x128xbf16> to vector<1x16x128xbf16>
    tpu.vector_store %arg7[%c0_30, %c0_31, %c0_32], %80 {strides = array<i32>} : memref<1x16x128xbf16, #tpu.memory_space<vmem>>, vector<1x16x128xbf16>,
    return
  }
  func.func @transform_0(%arg0: i32, %arg1: i32) -> (i32, i32, i32) {
    %c0_i32 = arith.constant 0 : i32
    %c0_i32_0 = arith.constant 0 : i32
    %c0_i32_1 = arith.constant 0 : i32
    return %arg0, %c0_i32, %c0_i32_0 : i32, i32, i32
  }
  func.func @transform_1(%arg0: i32, %arg1: i32) -> (i32, i32) {
    %c0_i32 = arith.constant 0 : i32
    %c0_i32_0 = arith.constant 0 : i32
    %c0_i32_1 = arith.constant 0 : i32
    return %c0_i32, %c0_i32_0 : i32, i32
  }
  func.func @transform_2(%arg0: i32, %arg1: i32) -> (i32, i32) {
    %c0_i32 = arith.constant 0 : i32
    %c0_i32_0 = arith.constant 0 : i32
    %c0_i32_1 = arith.constant 0 : i32
    return %c0_i32, %c0_i32_0 : i32, i32
  }
  func.func @transform_3(%arg0: i32, %arg1: i32) -> (i32, i32) {
    %c0_i32 = arith.constant 0 : i32
    %c0_i32_0 = arith.constant 0 : i32
    %c0_i32_1 = arith.constant 0 : i32
    return %c0_i32, %c0_i32_0 : i32, i32
  }
  func.func @transform_4(%arg0: i32, %arg1: i32) -> (i32, i32) {
    %c0_i32 = arith.constant 0 : i32
    %c0_i32_0 = arith.constant 0 : i32
    %c0_i32_1 = arith.constant 0 : i32
    return %c0_i32, %c0_i32_0 : i32, i32
  }
  func.func @transform_5(%arg0: i32, %arg1: i32) -> (i32, i32, i32) {
    %c0_i32 = arith.constant 0 : i32
    %c0_i32_0 = arith.constant 0 : i32
    return %arg0, %arg1, %c0_i32 : i32, i32, i32
  }
}

</mosaic_0001>

<bundles_post_ra>
// kernel: tpu_custom_call.1
= control target key start
LH: loop header
LB: loop body
LE: loop exit
PB: predicated region body
PF: predicated region fallthrough
CT: control target
= control target key end

     0   :  { %10 = vsyncpa [#allocation4], 0  ;;  %s1674_s0 = inlined_call_operand.vmem [shape: bf16[2,18,64], index: 0, kind: input, shape index: {}]   ;;  %s1675_s1 = inlined_call_operand.hbm [shape: bf16[64,144], index: 1, kind: input, shape index: {}]   ;;  %s1676_s2 = inlined_call_operand.vmem [shape: f32[1,144], index: 2, kind: input, shape index: {}]   ;;  %s1677_s3 = inlined_call_operand.vmem [shape: f32[9,128], index: 3, kind: input, shape index: {}]   ;;  %s1678_s4 = inlined_call_operand.vmem [shape: f32[1,128], index: 4, kind: input, shape index: {}]   ;;  %s1679_s5 = inlined_call_operand.hbm [shape: bf16[2,16,128], index: 5, kind: output, shape index: {}]  }
   0x1   :  { %11 = vsyncpa [#allocation5], 0 }
   0x2   :  { %13 = vsyncpa [#allocation5 + $0x1], 0  ;;  %s1238_s18 = smov 0   ;;  %s1240_s19 = smov 0  }
   0x3   :  { %s1242_s20 = smov 0   ;;  %s1244_s21 = smov 0  }
   0x4   :  { %s1246_s22 = smov 0   ;;  %s1248_s23 = smov 0  }
   0x5 LB: > { %s954_s24 = sadd.s32 4294967295, %s1196_s23   ;;  %s955_s25 = sadd.s32 4294967294, %s1196_s23   ;;  %s1196_s23 = sphi %s1248_s23, %s19_s23   ;;  %s1192_s22 = sphi %s1246_s22, %s1697_s22   ;;  %s1188_s21 = sphi %s1244_s21, %s1696_s21   ;;  %s1184_s20 = sphi %s1242_s20, %s1695_s20   ;;  %s1180_s19 = sphi %s1240_s19, %s1694_s19   ;;  %s1176_s18 = sphi %s1238_s18, %s1693_s18  }
   0x6   : > { %s31_s26 = sadd.s32 1, %s1192_s22  ;;  %s150_s27 = sadd.s32 1, %s1184_s20 }
   0x7   : > { %p33_p0 = scmp.ge.s32.totalorder %s31_s26, 2  ;;  %p160_p1 = scmp.ne.s32.totalorder %s1184_s20, %s1180_s19 }
   0x8   : > { %p161_p2 = scmp.eq.s32.totalorder %s954_s24, 1  ;;  %p166_p3 = scmp.ne.s32.totalorder %s1180_s19, %s1176_s18 }
   0x9   : > { %s1699_s26 = smov (%p33_p0, %s31_s26), 0  ;;  %p167_p5 = scmp.eq.s32.totalorder %s955_s25, 1 }
   0xa   : > { %p1278_p4 = por %p161_p2, %p160_p1  ;;  %s145_s29 = ssub.s32 %s1192_s22, %s1699_s26 }
   0xb   : > { %p956_p6 = scmp.ge.s32.totalorder %s1196_s23, 1  ;;  %p148_p7 = scmp.eq.s32.totalorder %s145_s29, 0 }
   0xc   : > { %s1684_s28 = scalar_select %p1278_p4, 1, 0 }
   0xd   : > { %p1285_p8 = por %p167_p5, %p166_p3  ;;  %p174_p9 = scmp.lt.s32.totalorder %s1196_s23, 3 }
   0xe   : > { %s1291_s6 = scalar_select %p148_p7, %s1184_s20, %s150_s27  }
   0xf   : > { %s1685_s30 = scalar_select %p1285_p8, 1, 0 }
  0x10   : > { %p1293_p10 = pnand %p956_p6, %p174_p9  ;;  %p1297_p11 = scmp.eq.s32.totalorder %s954_s24, 0 }
  0x11   : > { %s1198_s9 = smov [#allocation3]   ;;  %s1086_s14 = scalar_lea.hbm %s1675_s1, 1024 }
  0x12   : > { %s1686_s7 = scalar_select %p1293_p10, 1, 0 }
  0x13   : > { %s1687_s8 = scalar_select %p1297_p11, 1, 0 }
  0x14   : > { %p1004_p12 = pneg %p1293_p10  ;;  %s186_s10 = sshll.u32 %s1198_s9, 4  ;;  %s187_s10 = int_to_ptr.vmem [resolvable:$true] %s186_s10 }
  0x15   : > { %p1087_p0 = scmp.ne.s32.totalorder %s1675_s1, %s1086_s14  ;;  %p1093_p5 = scmp.lt.u32.totalorder %s1086_s14, %s1675_s1 }
  0x16   : > { %p1305_p13 = pnand %p1297_p11, %p1004_p12 }
  0x18   : > { %p1088_p1 = pneg %p1305_p13 }
  0x1a   : > { %p1089_p2 = pnand %p1088_p1, %p1087_p0 }
  0x1c   : > { %p1090_p3 = pneg %p1089_p2 }
  0x1e   : > { %p1095_p6 = pnand %p1093_p5, %p1090_p3 }
  0x20   : > { %1098 = shalt.err (!%p1095_p6)
}
  0x21   : > { %s1099_s25 = scalar_lea.vmem %s187_s10, 1024  ;;  %p1107_p8 = scmp.lt.s32.totalorder %s187_s10, %s187_s10 }
  0x22   : > { %p1100_p7 = scmp.ne.s32.totalorder %s187_s10, %s1099_s25  ;;  %p1108_p4 = scmp.lt.s32.totalorder %s1099_s25, %s1099_s25 }
  0x24   : > { %p1102_p9 = pnand %p1100_p7, %p1088_p1  ;;  %p1109_p11 = por %p1108_p4, %p1107_p8 }
  0x26   : > { %p1103_p12 = pneg %p1102_p9 }
  0x28   : > { %p1110_p10 = pnand %p1109_p11, %p1103_p12 }
  0x2a   : > { %1113 = shalt.err (!%p1110_p10)
}
  0x2b   : > { %s1199_s27 = smov 128   ;;  %s1200_s29 = smov 8  }
  0x2c   : > { %1007 = dma.hbm_to_vmem [thread:$0]  (!%p1305_p13), %s1675_s1, 1024, %s187_s10, [#allocation4], %s1199_s27, %s1199_s27, %s1200_s29  }
  0x2d   : > { %p1689_p0 = scmp.ne.s32.totalorder %s1686_s7, 0 }
  0x2e   : > { %p1690_p2 = scmp.ne.s32.totalorder (!%p1689_p0), %s1687_s8, 0 }
  0x2f   : > { %219 = sbr.rel (%p1689_p0) target bundleno = 612 (0x264), region = 40 }
  0x36   : > { %1167 = dma.done.wait (%p1690_p2), [#allocation4], 1024  }
  0x37   : > { %1169 = vsyncadd (%p1690_p2), [#allocation4], 4294966272  ;;  %p247_p4 = scmp.lt.s32.totalorder %s1188_s21, 1  ;;  %v1201_v0 = vmov 0   ;;  %v275_v1 = vlaneseq  ;;  %v1072_v2 = vld [vmem:[#allocation3 + $0x4] ss:$8 sps:$4 sm:$0xff]  }
  0x38   : > { %372 = vmatprep.mubr.bf16.mxu0 %v1201_v0  ;;  %382 = vmatprep.mubr.bf16.mxu1 %v1201_v0  ;;  %v1074_v4 = vld [vmem:[#allocation3] ss:$8 sps:$4 sm:$0xff]   ;;  %v1075_v5 = vld [vmem:[#allocation3 + $0x14] ss:$8 sps:$4 sm:$0xff]   ;;  %v1077_v6 = vld [vmem:[#allocation3 + $0x10] ss:$8 sps:$4 sm:$0xff]  }
  0x39   : > { %s248_s11 = scalar_select %p247_p4, %s1188_s21, 1  ;;  %v1333_v3 = vshrl.u32 %v275_v1, 7  ;;  %340 = vmatprep.subr.bf16.mxu0 %v1072_v2  ;;  %989 = vmatprep.subr.bf16.mxu1 %v1072_v2  ;;  %v1078_v7 = vld [vmem:[#allocation3 + $0x24] ss:$8 sps:$4 sm:$0xff]   ;;  %v1080_v10 = vld [vmem:[#allocation3 + $0x20] ss:$8 sps:$4 sm:$0xff]  }
  0x3a   : > { %341 = vmatpush1.bf16.msra.mxu0 %v1074_v4  ;;  %993 = vmatpush1.bf16.msra.mxu1 %v1074_v4  ;;  %v976_v11 = vld [vmem:[%s1677_s3 + $0x8] ss:$0 sm:$0xff]  ;;  %v1346_v12 = vld [vmem:[%s1677_s3] sm:$0xff]  ;;  %s1202_s24 = smov 16   ;;  %s1203_s29 = smov 8   ;;  %vm333_vm0 = vcmask 523264  }
  0x3b   : > { %s997_s13 = smul.u32 12, %s248_s11  ;;  %342 = vmatprep.subr.bf16.mxu0 %v1075_v5  ;;  %990 = vmatprep.subr.bf16.mxu1 %v1075_v5  ;;  %v534_v8 = vsub.s32 2, %v1333_v3  ;;  %v609_v9 = vsub.s32 5, %v1333_v3  ;;  %v1081_v13 = vld [vmem:[#allocation3 + $0x34] ss:$8 sps:$4 sm:$0xff]   ;;  %v443_v15 = vsub.s32 4, %v1333_v3 }
  0x3c   : > { %736 = vrot.lane.b32.xlu1 %v976_v11, %s1202_s24  ;;  %v975_v16 = vld [vmem:[%s1678_s4] ss:$0 sm:$0xff]  ;;  %v281_v19 = vsub.s32 1, %v1333_v3  ;;  %v691_v21 = vsub.s32 7, %v1333_v3  ;;  %v277_v27 = vsub.s32 0, %v1333_v3  ;;  %v401_v29 = vadd.s32 16, %v1333_v3 }
  0x3d   : > { %s251_s10 = scalar_lea.vmem %s1674_s0, %s997_s13  ;;  %v535_v14 = vrot.slane %v1346_v12, %v534_v8  ;;  %v610_v17 = vrot.slane %v1346_v12, %v609_v9  ;;  %v1083_v18 = vld [vmem:[#allocation3 + $0x30] ss:$8 sps:$4 sm:$0xff]   ;;  %v444_v20 = vrot.slane %v1346_v12, %v443_v15  ;;  %v403_v31 = vadd.s32 4294967295, %v1333_v3  ;;  %s1204_s11 = smov 120  }
  0x3e   : > { %343 = vmatpush1.bf16.msra.mxu0 %v1077_v6  ;;  %994 = vmatpush1.bf16.msra.mxu1 %v1077_v6  ;;  %v1084_v22 = vld [vmem:[%s251_s10] sm:$0xff]   ;;  %v1085_v23 = vld [vmem:[%s251_s10 + $0x8] ss:$0 sps:$4 sm:$0x11]   ;;  %v501_v24 = vrot.slane %v1346_v12, %v281_v19  ;;  %v692_v25 = vrot.slane %v1346_v12, %v691_v21  ;;  %v405_v32 = vadd.s32 4294967295, %v401_v29  ;;  %vm428_vm3 = vcmask 130048  }
  0x3f   : > { %344 = vmatprep.subr.bf16.mxu0 %v1078_v7  ;;  %991 = vmatprep.subr.bf16.mxu1 %v1078_v7  ;;  %v262_v28 = vld [vmem:[%s1676_s2] sm:$0x3]  ;;  %vm406_vm1 = vcmp.ge.s32.totalorder %v403_v31, 0  ;;  %v473_v51 = vrot.slane %v1346_v12, %v277_v27  ;;  %vm433_vm4 = vcmask 123904   ;;  %v584_v2 = vsub.s32 3, %v1333_v3  ;;  %s244_s13 = sand.u32 1, %s1180_s19  }
  0x40   : > { %537 = vrot.lane.b32.xlu0 %v535_v14, %s1202_s24  ;;  %460 = vrot.lane.b32.xlu1 %v975_v16, %s1203_s29  ;;  %v278_v30 = vrot.slane %v262_v28, %v277_v27  ;;  %v282_v33 = vrot.slane %v262_v28, %v281_v19  ;;  %vm411_vm2 = vcmp.lt.s32.totalorder %v405_v32, 16  ;;  %vm478_vm5 = vcmask 1040384   ;;  %s961_s7 = sshll.u32 %s244_s13, 3  ;;  %s988_s14 = sshll.u32 %s1188_s21, 7 }
  0x41   : > { %v585_v14 = vrot.slane %v1346_v12, %v584_v2  ;;  %vm666_vm6 = vcmask 1046528   ;;  %vm566_vm7 = vcmask 982016   ;;  %vm811_vm8 = vsmask.f32 3328  ;;  %s246_s8 = scalar_lea.vmem [#allocation6], %s961_s7  ;;  %s1625_s17 = scalar_lea.hbm %s1679_s5, %s988_s14 }
  0x42   : > { %345 = vmatpush1.bf16.msra.mxu0 %v1080_v10  ;;  %995 = vmatpush1.bf16.msra.mxu1 %v1080_v10  ;;  %vm812_vm9 = vsmask.f32 7440  ;;  %s867_s10 = sshll.u32 %s246_s8, 4  ;;  %p1691_p10 = scmp.ne.s32.totalorder %s1684_s28, 0  ;;  %s1620_s10 = int_to_ptr.vmem [resolvable:$true] %s867_s10 }
  0x43   : > { %346 = vmatprep.subr.bf16.mxu0 %v1081_v13  ;;  %992 = vmatprep.subr.bf16.mxu1 %v1081_v13  ;;  %vm813_vm10 = vmor %vm811_vm8, %vm812_vm9  ;;  %s1114_s25 = scalar_lea.vmem %s1620_s10, 128  ;;  %s1205_s21 = smov [#allocation6]  }
  0x44   : > { %612 = vrot.lane.b32.xlu0 %v610_v17, %s1202_s24  ;;  %446 = vrot.lane.b32.xlu1 %v444_v20, %s1203_s29  ;;  %s1628_s24 = scalar_lea.sflag [#allocation5], %s244_s13  ;;  %p1115_p8 = scmp.ne.s32.totalorder %s1620_s10, %s1114_s25 }
  0x45   : > { %s1118_s27 = sshll.u32 %s1205_s21, 4  ;;  %s1119_s27 = int_to_ptr.vmem [resolvable:$false] %s1118_s27 }
  0x46   : > { %347 = vmatpush1.bf16.msra.mxu0 %v1083_v18  ;;  %996 = vmatpush1.bf16.msra.mxu1 %v1083_v18  ;;  %p1116_p11 = pnand %p1115_p8, %p1691_p10  ;;  %p1121_p1 = scmp.lt.s32.totalorder %s1620_s10, %s1119_s27 }
  0x48   : > { %503 = vrot.lane.b32.xlu0 %v501_v24, %s1203_s29  ;;  %694 = vrot.lane.b32.xlu1 %v692_v25, %s1203_s29  ;;  %p1117_p13 = pneg %p1116_p11 }
  0x49   : > { %973 = vmatmul.mubr.msk.bf16.vlgmr.msra.gmra.mrb[0].mxu0 %vm333_vm0, %v1084_v22  ;;  %974 = vmatmul.mubr.msk.bf16.vlgmr.msra.gmra.mrb[0].mxu1 %vm333_vm0, %v1085_v23 }
  0xae   : > { %v1373_v35 = vpop.permute.xlu1 %736 }
  0xb2   : > { %v1363_v26 = vpop.permute.xlu0 %537  ;;  %v1391_v1 = vpop.permute.xlu1 %460 }
  0xb6   : > { %v1371_v34 = vpop.permute.xlu0 %612  ;;  %v1436_v20 = vpop.permute.xlu1 %446 }
  0xba   : > { %v504_v55 = vpop.permute.xlu0 %503 }
 0x11c   : > { %v374_v36 = vpop.f32.mrb[0].mxu0  ;;  %v384_v37 = vpop.f32.mrb[0].mxu1 }
 0x11d   : > { %v375_v38 = vadd.f32 %v374_v36, %v278_v30  ;;  %v385_v39 = vadd.f32 %v384_v37, %v278_v30  ;;  %v376_v40 = vpop.f32.mrb[1].mxu0  ;;  %v386_v41 = vpop.f32.mrb[1].mxu1 }
 0x11e   : > { %v377_v42 = vadd.f32 %v376_v40, %v282_v33  ;;  %v387_v43 = vadd.f32 %v386_v41, %v282_v33  ;;  %v378_v44 = vpop.f32.mrb[2].mxu0  ;;  %v388_v45 = vpop.f32.mrb[2].mxu1 }
 0x11f   : > { %v391_v46 = vmax.f32 %v375_v38, 0.0  ;;  %v395_v47 = vmax.f32 %v385_v39, 0.0  ;;  %v379_v48 = vadd.f32 %v378_v44, %v278_v30  ;;  %v380_v49 = vpop.f32.mrb[3].mxu0  ;;  %v389_v50 = vpop.f32.mrb[3].mxu1 }
 0x120   : > { %v392_v52 = vmax.f32 %v377_v42, 0.0  ;;  %v396_v53 = vmax.f32 %v387_v43, 0.0  ;;  %v381_v54 = vadd.f32 %v380_v49, %v282_v33  ;;  %v695_v30 = vpop.permute.xlu1 %694 }
 0x121   : > { %v421_v56 = vsel %vm406_vm1, %v391_v46, 0.0  ;;  %v425_v57 = vsel %vm411_vm2, %v395_v47, 0.0  ;;  %v1378_v58 = vmax.f32 %v379_v48, 0.0 }
 0x122   : > { %427 = vst [vmem:[#allocation2] sm:$0xff] %v421_v56  ;;  %432 = vst [vmem:[#allocation2 + $0x20] sm:$0x3] %v425_v57  ;;  %v422_v59 = vsel %vm406_vm1, %v392_v52, 0.0  ;;  %v426_v60 = vsel %vm411_vm2, %v396_v53, 0.0  ;;  %v394_v61 = vmax.f32 %v381_v54, 0.0  ;;  %v1383_v62 = vmul.f32 %v504_v55, %v421_v56 }
 0x123   : > { %429 = vst.msk [vmem:[#allocation2 + $0x8] sm:$0xff] %vm428_vm3, %v422_v59  ;;  %v1386_v63 = vmul.f32 %v504_v55, %v1378_v58  ;;  %v1388_v0 = vmul.f32 %v473_v51, %v421_v56  ;;  %v1395_v4 = vmul.f32 %v1363_v26, %v421_v56  ;;  %v1399_v5 = vmul.f32 %v1363_v26, %v1378_v58 }
 0x124   : > { %434 = vst.msk [vmem:[#allocation2 + $0x28] sm:$0x3] %vm433_vm4, %v426_v60  ;;  %v1402_v6 = vmul.f32 %v473_v51, %v1378_v58  ;;  %v514_v13 = vrot.slane %v1383_v62, 7  ;;  %v587_v25 = vmul.f32 %v585_v14, %v1378_v58  ;;  %v699_v43 = vmul.f32 %v695_v30, %v1378_v58 }
 0x125   : > { %431 = vst.msk [vmem:[#allocation2 + $0x18] sm:$0xff] %vm428_vm3, %v394_v61  ;;  %v516_v7 = vrot.slane %v1386_v63, 7  ;;  %v479_v8 = vrot.slane %v1388_v0, 7  ;;  %v548_v9 = vrot.slane %v1395_v4, 7  ;;  %v550_v10 = vrot.slane %v1399_v5, 7 }
 0x126   : > { %v480_v11 = vrot.slane %v1402_v6, 7  ;;  %v617_v44 = vmul.f32 %v1371_v34, %v1378_v58  ;;  %v710_v53 = vrot.slane %v699_v43, 1  ;;  %v658_v61 = vsub.s32 6, %v1333_v3 }
 0x127   : > { %v1423_v16 = vsel %vm478_vm5, %v548_v9, %v550_v10  ;;  %v1434_v19 = vsel %vm478_vm5, %v514_v13, %v516_v7 }
 0x128   : > { %v1416_v15 = vsel %vm478_vm5, %v479_v8, %v480_v11  ;;  %v659_v3 = vrot.slane %v1346_v12, %v658_v61 }
 0x129   : > { %v1425_v17 = vld [vmem:[#allocation2 + $0x20] sm:$0x1]  ;;  %v1427_v18 = vld [vmem:[#allocation2] sm:$0xfe] }
 0x12a   : > { %v588_v21 = vmul.f32 %v585_v14, %v1425_v17  ;;  %v586_v22 = vmul.f32 %v585_v14, %v1427_v18  ;;  %v615_v24 = vmul.f32 %v1371_v34, %v1427_v18  ;;  %v1447_v27 = vld [vmem:[#allocation2 + $0x8] sm:$0xfc]  ;;  %v619_v36 = vmul.f32 %v1371_v34, %v1425_v17  ;;  %v654_v38 = vld [vmem:[#allocation2] sm:$0xfc]  ;;  %v655_v40 = vld [vmem:[#allocation2 + $0x20] sm:$0x3] }
 0x12b   : > { %v1452_v29 = vld [vmem:[#allocation2 + $0x8] sm:$0xfe]  ;;  %v698_v32 = vmul.f32 %v695_v30, %v1447_v27  ;;  %v1461_v37 = vld [vmem:[#allocation2 + $0x28] sm:$0x1]  ;;  %v697_v49 = vmul.f32 %v695_v30, %v654_v38  ;;  %v1475_v50 = vmul.f32 %v695_v30, %v655_v40  ;;  %v739_v5 = vmul.f32 %v1373_v35, %v654_v38 }
 0x12c   : > { %v1440_v23 = vld [vmem:[#allocation2 + $0x18] sm:$0xff]  ;;  %596 = vrot.lane.b32.xlu0 %v588_v21, %s1203_s29  ;;  %592 = vrot.lane.b32.xlu1 %v586_v22, %s1203_s29  ;;  %v497_v31 = vld [vmem:[#allocation2 + $0x8] sm:$0xff]  ;;  %v616_v33 = vmul.f32 %v1371_v34, %v1452_v29  ;;  %v620_v45 = vmul.f32 %v1371_v34, %v1461_v37  ;;  %v453_v62 = vmul.f32 %v1436_v20, %v1425_v17 }
 0x12d   : > { %v1450_v28 = vmul.f32 %v504_v55, %v1440_v23  ;;  %v688_v41 = vld [vmem:[#allocation2 + $0x28] sm:$0x3]  ;;  %v1464_v42 = vmul.f32 %v504_v55, %v497_v31  ;;  %v541_v46 = vmul.f32 %v1363_v26, %v497_v31  ;;  %v712_v48 = vrot.slane %v698_v32, 1 }
 0x12e   : > { %v700_v51 = vmul.f32 %v695_v30, %v1440_v23  ;;  %v1478_v52 = vmul.f32 %v695_v30, %v688_v41  ;;  %v709_v55 = vrot.slane %v697_v49, 1  ;;  %v715_v56 = vrot.slane %v1475_v50, 1 }
 0x12f   : > { %v518_v39 = vrot.slane %v1450_v28, 7  ;;  %v515_v47 = vrot.slane %v1464_v42, 7  ;;  %v549_v60 = vrot.slane %v541_v46, 7  ;;  %v618_v30 = vmul.f32 %v1371_v34, %v1440_v23 }
 0x130   : > { %594 = vrot.lane.b32.xlu0 %v587_v25, %s1203_s29  ;;  %627 = vrot.lane.b32.xlu1 %v615_v24, %s1204_s11  ;;  %v713_v57 = vrot.slane %v700_v51, 1  ;;  %v717_v59 = vrot.slane %v1478_v52, 1  ;;  %v1493_v2 = vsel %vm666_vm6, %v709_v55, %v710_v53  ;;  %v1498_v14 = vsel %vm666_vm6, %v710_v53, %v715_v56 }
 0x131   : > { %v1485_v54 = vsel %vm478_vm5, %v515_v47, %v518_v39  ;;  %v660_v24 = vmul.f32 %v659_v3, %v654_v38  ;;  %v661_v25 = vmul.f32 %v659_v3, %v1378_v58  ;;  %v543_v0 = vmul.f32 %v1363_v26, %v1440_v23 }
 0x132   : > { %v1501_v21 = vsel %vm666_vm6, %v712_v48, %v713_v57  ;;  %v1506_v22 = vsel %vm666_vm6, %v713_v57, %v717_v59  ;;  %v741_v26 = vmul.f32 %v1373_v35, %v1378_v58  ;;  %v662_v34 = vmul.f32 %v659_v3, %v655_v40 }
 0x133   : > { %v668_v12 = vrot.slane %v661_v25, 1  ;;  %v751_v31 = vrot.slane %v739_v5, 1  ;;  %v742_v38 = vmul.f32 %v1373_v35, %v1440_v23  ;;  %v450_v57 = vmul.f32 %v1436_v20, %v1452_v29 }
 0x134   : > { %629 = vrot.lane.b32.xlu0 %v616_v33, %s1204_s11  ;;  %635 = vrot.lane.b32.xlu1 %v619_v36, %s1204_s11  ;;  %v752_v32 = vrot.slane %v741_v26, 1  ;;  %v670_v33 = vrot.slane %v662_v34, 1  ;;  %v740_v36 = vmul.f32 %v1373_v35, %v1447_v27 }
 0x136   : > { %v753_v6 = vsel %vm666_vm6, %v751_v31, %v752_v32 }
 0x138   : > { %637 = vrot.lane.b32.xlu0 %v620_v45, %s1204_s11  ;;  %631 = vrot.lane.b32.xlu1 %v617_v44, %s1204_s11  ;;  %v754_v44 = vrot.slane %v740_v36, 1  ;;  %v755_v45 = vrot.slane %v742_v38, 1  ;;  %v467_v36 = vadd.f32 %v1391_v1, %v453_v62 }
 0x13a   : > { %v756_v27 = vsel %vm666_vm6, %v754_v44, %v755_v45 }
 0x13c   : > { %482 = vrot.lane.b32.xlu0 %v479_v8, %s1203_s29  ;;  %556 = vrot.lane.b32.xlu1 %v549_v60, %s1204_s11  ;;  %v667_v8 = vrot.slane %v660_v24, 1  ;;  %v464_v24 = vadd.f32 %v1391_v1, %v450_v57 }
 0x13e   : > { %v669_v4 = vsel %vm666_vm6, %v667_v8, %v668_v12 }
 0x140   : > { %554 = vrot.lane.b32.xlu0 %v548_v9, %s1204_s11  ;;  %562 = vrot.lane.b32.xlu1 %v550_v10, %s1204_s11  ;;  %v552_v9 = vrot.slane %v543_v0, 7 }
 0x142   : > { %v553_v10 = vsel %vm478_vm5, %v549_v60, %v552_v9  ;;  %v449_v60 = vmul.f32 %v1436_v20, %v1427_v18  ;;  %v451_v18 = vmul.f32 %v1436_v20, %v1378_v58  ;;  %v454_v58 = vmul.f32 %v1436_v20, %v1461_v37 }
 0x144   : > { %633 = vrot.lane.b32.xlu0 %v618_v30, %s1204_s11  ;;  %484 = vrot.lane.b32.xlu1 %v1416_v15, %s1203_s29  ;;  %v743_v15 = vmul.f32 %v1373_v35, %v655_v40  ;;  %v744_v40 = vmul.f32 %v1373_v35, %v688_v41  ;;  %v463_v25 = vadd.f32 %v1391_v1, %v449_v60 }
 0x145   : > { %v465_v42 = vadd.f32 %v1391_v1, %v451_v18 }
 0x146   : > { %v759_v46 = vrot.slane %v744_v40, 1  ;;  %v468_v40 = vadd.f32 %v1391_v1, %v454_v58 }
 0x148   : > { %486 = vrot.lane.b32.xlu0 %v480_v11, %s1203_s29  ;;  %672 = vrot.lane.b32.xlu1 %v669_v4, %s1203_s29  ;;  %v757_v11 = vrot.slane %v743_v15, 1  ;;  %v760_v48 = vsel %vm666_vm6, %v755_v45, %v759_v46 }
 0x14a   : > { %v758_v43 = vsel %vm666_vm6, %v752_v32, %v757_v11 }
 0x14c   : > { %558 = vrot.lane.b32.xlu0 %v1423_v16, %s1204_s11  ;;  %560 = vrot.lane.b32.xlu1 %v553_v10, %s1204_s11  ;;  %v671_v16 = vsel %vm666_vm6, %v668_v12, %v670_v33 }
 0x150   : > { %564 = vrot.lane.b32.xlu0 %v552_v9, %s1204_s11  ;;  %761 = vrot.lane.b32.xlu1 %v753_v6, %s1204_s11  ;;  %v452_v9 = vmul.f32 %v1436_v20, %v1440_v23 }
 0x154   : > { %674 = vrot.lane.b32.xlu0 %v671_v16, %s1203_s29  ;;  %765 = vrot.lane.b32.xlu1 %v758_v43, %s1204_s11 }
 0x158   : > { %763 = vrot.lane.b32.xlu0 %v756_v27, %s1204_s11  ;;  %676 = vrot.lane.b32.xlu1 %v670_v33, %s1203_s29  ;;  %s1120_s29 = scalar_lea.vmem %s1119_s27, 256 }
 0x159   : > { %p1122_p3 = scmp.lt.s32.totalorder %s1120_s29, %s1114_s25 }
 0x15b   : > { %p1123_p5 = por %p1122_p3, %p1121_p1 }
 0x15c   : > { %767 = vrot.lane.b32.xlu0 %v760_v48, %s1204_s11  ;;  %771 = vrot.lane.b32.xlu1 %v759_v46, %s1204_s11 }
 0x15d   : > { %p1124_p6 = pnand %p1123_p5, %p1117_p13 }
 0x160   : > { %769 = vrot.lane.b32.xlu0 %v757_v11, %s1204_s11 }
 0x19e   : > { %v1559_v35 = vpop.permute.xlu0 %596  ;;  %v593_v41 = vpop.permute.xlu1 %592 }
 0x1a2   : > { %v595_v49 = vpop.permute.xlu0 %594  ;;  %v628_v51 = vpop.permute.xlu1 %627 }
 0x1a6   : > { %v630_v53 = vpop.permute.xlu0 %629  ;;  %v1561_v55 = vpop.permute.xlu1 %635 }
 0x1a7   : > { %v639_v33 = vsel %vm566_vm7, %v628_v51, %v630_v53 }
 0x1aa   : > { %v1567_v61 = vpop.permute.xlu0 %637  ;;  %v632_v3 = vpop.permute.xlu1 %631 }
 0x1ae   : > { %v483_v30 = vpop.permute.xlu0 %482  ;;  %v557_v0 = vpop.permute.xlu1 %556 }
 0x1af   : > { %v491_v8 = vadd.f32 %v483_v30, %v463_v25  ;;  %v492_v12 = vadd.f32 %v483_v30, %v464_v24 }
 0x1b1   : > { %v526_v4 = vadd.f32 %v514_v13, %v491_v8  ;;  %v527_v29 = vadd.f32 %v515_v47, %v492_v12  ;;  %v466_v47 = vadd.f32 %v1391_v1, %v452_v9 }
 0x1b2   : > { %v555_v5 = vpop.permute.xlu0 %554  ;;  %v563_v26 = vpop.permute.xlu1 %562 }
 0x1b3   : > { %v577_v34 = vadd.f32 %v557_v0, %v527_v29  ;;  %v567_v10 = vsel %vm566_vm7, %v555_v5, %v557_v0 }
 0x1b4   : > { %v576_v31 = vadd.f32 %v567_v10, %v526_v4 }
 0x1b5   : > { %v602_v13 = vadd.f32 %v593_v41, %v577_v34 }
 0x1b6   : > { %v601_v15 = vadd.f32 %v593_v41, %v576_v31  ;;  %v634_v23 = vpop.permute.xlu0 %633  ;;  %v485_v32 = vpop.permute.xlu1 %484 }
 0x1b7   : > { %v493_v6 = vadd.f32 %v485_v32, %v465_v42  ;;  %v494_v11 = vadd.f32 %v485_v32, %v466_v47  ;;  %v649_v16 = vadd.f32 %v630_v53, %v602_v13  ;;  %v640_v63 = vsel %vm566_vm7, %v632_v3, %v634_v23 }
 0x1b8   : > { %v648_v38 = vadd.f32 %v639_v33, %v601_v15 }
 0x1b9   : > { %v528_v17 = vadd.f32 %v1434_v19, %v493_v6  ;;  %v529_v43 = vadd.f32 %v1485_v54, %v494_v11 }
 0x1ba   : > { %v487_v44 = vpop.permute.xlu0 %486  ;;  %v673_v45 = vpop.permute.xlu1 %672 }
 0x1bb   : > { %v495_v20 = vadd.f32 %v487_v44, %v467_v36  ;;  %v496_v37 = vadd.f32 %v487_v44, %v468_v40  ;;  %v681_v27 = vadd.f32 %v673_v45, %v648_v38  ;;  %v682_v46 = vadd.f32 %v673_v45, %v649_v16 }
 0x1bd   : > { %v530_v48 = vadd.f32 %v516_v7, %v495_v20  ;;  %v725_v41 = vadd.f32 %v1493_v2, %v681_v27  ;;  %v531_v51 = vadd.f32 %v518_v39, %v496_v37  ;;  %v726_v19 = vadd.f32 %v1501_v21, %v682_v46 }
 0x1be   : > { %v559_v1 = vpop.permute.xlu0 %558  ;;  %v561_v53 = vpop.permute.xlu1 %560 }
 0x1bf   : > { %v568_v54 = vsel %vm566_vm7, %v559_v1, %v561_v53  ;;  %v579_v57 = vadd.f32 %v561_v53, %v529_v43 }
 0x1c0   : > { %v578_v60 = vadd.f32 %v568_v54, %v528_v17 }
 0x1c1   : > { %v604_v24 = vadd.f32 %v595_v49, %v579_v57 }
 0x1c2   : > { %v603_v25 = vadd.f32 %v595_v49, %v578_v60  ;;  %v565_v30 = vpop.permute.xlu0 %564  ;;  %v762_v0 = vpop.permute.xlu1 %761  ;;  %v641_v49 = vsel %vm566_vm7, %v1561_v55, %v1567_v61 }
 0x1c3   : > { %v569_v7 = vsel %vm566_vm7, %v563_v26, %v565_v30  ;;  %v581_v2 = vadd.f32 %v565_v30, %v531_v51  ;;  %v651_v21 = vadd.f32 %v634_v23, %v604_v24 }
 0x1c4   : > { %v580_v8 = vadd.f32 %v569_v7, %v530_v48  ;;  %v650_v28 = vadd.f32 %v640_v63, %v603_v25 }
 0x1c5   : > { %v606_v39 = vadd.f32 %v1559_v35, %v581_v2 }
 0x1c6   : > { %v605_v12 = vadd.f32 %v1559_v35, %v580_v8  ;;  %v675_v4 = vpop.permute.xlu0 %674  ;;  %v766_v29 = vpop.permute.xlu1 %765 }
 0x1c7   : > { %v683_v18 = vadd.f32 %v675_v4, %v650_v28  ;;  %v684_v9 = vadd.f32 %v675_v4, %v651_v21  ;;  %v653_v26 = vadd.f32 %v1567_v61, %v606_v39 }
 0x1c8   : > { %v652_v5 = vadd.f32 %v641_v49, %v605_v12 }
 0x1c9   : > { %v727_v3 = vadd.f32 %v1498_v14, %v683_v18  ;;  %v728_v34 = vadd.f32 %v1506_v22, %v684_v9 }
 0x1ca   : > { %v764_v10 = vpop.permute.xlu0 %763  ;;  %v677_v31 = vpop.permute.xlu1 %676 }
 0x1cb   : > { %v773_v62 = vsel %vm566_vm7, %v762_v0, %v764_v10  ;;  %v783_v35 = vadd.f32 %v764_v10, %v726_v19  ;;  %v685_v13 = vadd.f32 %v677_v31, %v652_v5  ;;  %v686_v42 = vadd.f32 %v677_v31, %v653_v26 }
 0x1cc   : > { %v782_v47 = vadd.f32 %v773_v62, %v725_v41 }
 0x1cd   : > { %v789_v58 = vmax.f32 %v783_v35, 0.0  ;;  %v729_v55 = vadd.f32 %v715_v56, %v685_v13  ;;  %v730_v15 = vadd.f32 %v717_v59, %v686_v42 }
 0x1ce   : > { %v788_v14 = vmax.f32 %v782_v47, 0.0  ;;  %v768_v23 = vpop.permute.xlu0 %767  ;;  %v772_v61 = vpop.permute.xlu1 %771 }
 0x1cf   : > { %v774_v22 = vsel %vm566_vm7, %v766_v29, %v768_v23  ;;  %v785_v32 = vadd.f32 %v768_v23, %v728_v34  ;;  %v787_v36 = vadd.f32 %v772_v61, %v730_v15 }
 0x1d0   : > { %v985_v33 = vpack.c.bf16 %v789_v58, %v788_v14  ;;  %v784_v6 = vadd.f32 %v774_v22, %v727_v3 }
 0x1d1   : > { %v791_v11 = vmax.f32 %v785_v32, 0.0  ;;  %v793_v44 = vmax.f32 %v787_v36, 0.0 }
 0x1d2   : > { %v815_v38 = vshrl.u32 %v985_v33, 16  ;;  %v818_v17 = vshll.u32 %v985_v33, 16  ;;  %v790_v40 = vmax.f32 %v784_v6, 0.0  ;;  %v770_v16 = vpop.permute.xlu0 %769 }
 0x1d3   : > { %v775_v50 = vsel %vm566_vm7, %v770_v16, %v772_v61 }
 0x1d4   : > { %v817_v52 = vrot.slane %v815_v38, 4  ;;  %v820_v56 = vrot.slane %v818_v17, 5  ;;  %v986_v59 = vpack.c.bf16 %v791_v11, %v790_v40  ;;  %v786_v43 = vadd.f32 %v775_v50, %v729_v55 }
 0x1d6   : > { %v824_v45 = vshll.u32 %v986_v59, 16  ;;  %v828_v20 = vshrl.u32 %v986_v59, 16  ;;  %v792_v37 = vmax.f32 %v786_v43, 0.0  ;;  %v821_v27 = vor.u32 %v820_v56, %v817_v52 }
 0x1d8   : > { %v830_v46 = vrot.slane %v828_v20, 4  ;;  %v987_v48 = vpack.c.bf16 %v793_v44, %v792_v37  ;;  %v822_v41 = vrot.slane %v821_v27, 4  ;;  %v826_v51 = vrot.slane %v824_v45, 5 }
 0x1da   : > { %v834_v19 = vshll.u32 %v987_v48, 16  ;;  %v827_v1 = vsel %vm813_vm10, %v822_v41, %v826_v51  ;;  %v831_v53 = vor.u32 %v830_v46, %v826_v51 }
 0x1db   : > { %838 = vrot.lane.b32.xlu0 %v827_v1, %s1204_s11 }
 0x1dc   : > { %v832_v54 = vrot.slane %v831_v53, 4  ;;  %v836_v57 = vrot.slane %v834_v19, 5 }
 0x1de   : > { %v837_v60 = vsel %vm813_vm10, %v832_v54, %v836_v57 }
 0x1df   : > { %840 = vrot.lane.b32.xlu1 %v837_v60, %s1204_s11 }
 0x24d   : > { %v839_v24 = vpop.permute.xlu0 %838 }
 0x24e   : > { %v842_v25 = vrot.slane %v839_v24, 4 }
 0x250   : > { %v845_v30 = vsel %vm566_vm7, %v839_v24, %v842_v25 }
 0x251   : > { %849 = vst [vmem:[%s246_s8] sm:$0xf] %v845_v30  ;;  %v841_v0 = vpop.permute.xlu1 %840 }
 0x252   : > { %v843_v63 = vrot.slane %v841_v0, 4 }
 0x254   : > { %v846_v7 = vsel %vm566_vm7, %v841_v0, %v843_v63 }
 0x255   : > { %850 = vst [vmem:[%s246_s8 + $0x4] sm:$0xf] %v846_v7 }
 0x256   : > { %1127 = shalt.err (!%p1124_p6)
}
 0x257   : > { %s1128_s9 = scalar_lea.hbm %s1625_s17, 128  ;;  %s1132_s13 = scalar_lea.hbm %s1679_s5, 256 }
 0x258   : > { %p1129_p7 = scmp.ne.s32.totalorder %s1625_s17, %s1128_s9  ;;  %p1133_p0 = scmp.lt.u32.totalorder %s1625_s17, %s1679_s5 }
 0x259   : > { %p1134_p2 = scmp.lt.u32.totalorder %s1132_s13, %s1128_s9  ;;  %p1136_p8 = scmp.lt.u32.totalorder %s1128_s9, %s1625_s17 }
 0x25a   : > { %p1130_p9 = pnand %p1129_p7, %p1691_p10 }
 0x25b   : > { %p1135_p4 = por %p1134_p2, %p1133_p0 }
 0x25c   : > { %p1131_p12 = pneg %p1130_p9 }
 0x25d   : > { %p1137_p11 = por %p1136_p8, %p1135_p4 }
 0x25f   : > { %p1138_p13 = pnand %p1137_p11, %p1131_p12 }
 0x261   : > { %1141 = shalt.err (!%p1138_p13)
}
 0x262   : > { %s1206_s14 = smov 64   ;;  %s1207_s15 = smov 4  }
 0x263   : > { %1002 = dma.vmem_to_hbm [thread:$0]  (%p1691_p10), %s1620_s10, 128, %s1625_s17, %s1628_s24, %s1206_s14, %s1206_s14, %s1207_s15  }
 0x264 PF: > { %p1014_p1 = scmp.ge.s32.totalorder %s1196_s23, 2  ;;  %s882_s16 = sand.u32 1, %s1176_s18  }
 0x265   : > { %p1692_p3 = scmp.ne.s32.totalorder %s1685_s30, 0  ;;  %s883_s25 = scalar_lea.sflag [#allocation5], %s882_s16 }
 0x267   : > { %p1009_p5 = pnand %p1014_p1, %p1692_p3 }
 0x269   : > { %1171 = dma.done.wait (!%p1009_p5), %s883_s25, 128  }
 0x26a   : > { %1173 = vsyncadd (!%p1009_p5), %s883_s25, 4294967168  ;;  %s19_s23 = sadd.s32 1, %s1196_s23   ;;  %s1693_s18 = smov %s1180_s19 }
 0x26b   : > { %p16_p6 = scmp.ge.s32.totalorder %s19_s23, 4   ;;  %s1694_s19 = smov %s1184_s20 }
 0x26c   : > { %s1695_s20 = smov %s1291_s6  ;;  %s1696_s21 = smov %s1192_s22 }
 0x26d   : > { %s1697_s22 = smov %s1699_s26  ;;  %18 = sbr.rel (!%p16_p6) target bundleno = 5 (0x5), region = 81 }
 0x274   :  { %888 = vsyncpa [#allocation4], 1 }
 0x275   :  { %890 = vsyncpa [#allocation4 + $0x1], 1 }
 0x276   :  { %891 = vsyncpa [#allocation5], 1 }
 0x277   :  { %893 = vsyncpa [#allocation5 + $0x1], 1 }

</bundles_post_ra>
